<compile_context>
chip_gen: v7x
topology: tpu7x:2x2x1
jax: 0.10.0
libtpu: 0.0.40
codegen_flags: <defaults>
</compile_context>

<pallas_src>
import functools

import jax
import jax.numpy as jnp
from jax.experimental import pallas as pl
from jax.experimental.pallas import tpu as pltpu


# Large finite negative: exp() underflows to 0 exactly, and a fully-masked row would
# still not produce inf - inf = NaN.
_MASK_VALUE = -0.7 * float(jnp.finfo(jnp.float32).max)


def _head_kernel(x_ref, w_ref, o_ref, *, head_size, mxu_dtype, approx_reciprocal):
    # x_ref: (Bt, T, C)   w_ref: (C, 3H)   o_ref: (Bt, T, H)
    Bt, T, C = x_ref.shape
    H = head_size

    # ---- fused K/Q/V projection: one MXU matmul, M = Bt*T, N = 3H ----
    x2d = x_ref[...].reshape(Bt * T, C).astype(mxu_dtype)
    kqv = jnp.dot(x2d, w_ref[...], preferred_element_type=jnp.float32)   # (Bt*T, 3H) f32
    kqv = kqv.reshape(Bt, T, 3 * H)
    k = kqv[:, :, 0 * H:1 * H]                                           # (Bt, T, H)
    q = kqv[:, :, 1 * H:2 * H]
    v = kqv[:, :, 2 * H:3 * H]

    # Scale q (O(T*H) elements) instead of the (T, T) scores.
    q = q * jnp.float32(H) ** -0.5

    # Scores: contract the head axis of q and k directly (batched over Bt).
    scores = jax.lax.dot_general(
        q.astype(mxu_dtype), k.astype(mxu_dtype),
        dimension_numbers=(((2,), (2,)), ((0,), (0,))),
        preferred_element_type=jnp.float32)                              # (Bt, T, T)

    # Causal mask (lower triangular), same as masked_fill(tril == 0, -inf).
    row = jax.lax.broadcasted_iota(jnp.int32, (T, T), 0)
    col = jax.lax.broadcasted_iota(jnp.int32, (T, T), 1)
    scores = jnp.where((row >= col)[None, :, :], scores, _MASK_VALUE)

    # Numerically stable softmax numerator/denominator, all in f32.
    m = jnp.max(scores, axis=-1, keepdims=True)
    p = jnp.exp(scores - m)
    denom = jnp.sum(p, axis=-1, keepdims=True)                           # (Bt, T, 1)

    # (dropout is identity in eval mode)

    # Deferred normalization: PV matmul on unnormalized p, then scale the (Bt, T, H)
    # result by 1/denom (EUP reciprocal) instead of the (Bt, T, T) weights.
    out = jax.lax.dot_general(
        p.astype(mxu_dtype), v.astype(mxu_dtype),
        dimension_numbers=(((2,), (1,)), ((0,), (0,))),
        preferred_element_type=jnp.float32)                              # (Bt, T, H)
    out = out * pl.reciprocal(denom, approx=approx_reciprocal)
    o_ref[...] = out.astype(o_ref.dtype)


def pack_head_weights(wk, wq, wv, mxu_dtype=jnp.bfloat16):
    """Pack the three (C, H) projection weights (== PyTorch weight.T) into one (C, 3H)
    matrix in the MXU operand dtype.  Call once at parameter-setup time (hoisted out of
    the per-forward path)."""
    return jnp.concatenate([wk, wq, wv], axis=1).astype(mxu_dtype)


def head_forward(x, w_all, head_size, *, approx_reciprocal=True):
    """x: (B, T, C) f32; w_all: (C, 3H) packed weights (see pack_head_weights).
    Returns (B, T, H) in x.dtype."""
    B, T, C = x.shape
    H = head_size
    assert w_all.shape == (C, 3 * H), (w_all.shape, C, H)

    # Batch rows per grid step: target ~256 LHS rows for the MXU, but keep >= 2 grid
    # steps whenever B >= 2 (pipelining + v7x's two TensorCores).
    target_rows = 256
    bt_cap = max(1, target_rows // T)
    if B >= 2:
        bt_cap = min(bt_cap, max(1, B // 2))
    bt = 1
    for d in range(min(B, bt_cap), 0, -1):       # largest divisor of B <= bt_cap
        if B % d == 0:
            bt = d
            break
    nb = B // bt

    mxu_dtype = w_all.dtype
    kernel = functools.partial(
        _head_kernel, head_size=H, mxu_dtype=mxu_dtype,
        approx_reciprocal=approx_reciprocal)

    cost = pl.CostEstimate(
        flops=2 * B * T * C * 3 * H + 2 * 2 * B * T * T * H,
        transcendentals=B * T * T,
        bytes_accessed=(x.size * x.dtype.itemsize
                        + w_all.size * w_all.dtype.itemsize
                        + B * T * H * x.dtype.itemsize),
    )

    # Explicit VMEM budget: double-buffered x/out blocks, resident weight tile, and the
    # compiler-managed kqv + (T, T) score/exp intermediates, with ~2x headroom.
    vmem_est = (2 * bt * T * C * 4
                + w_all.size * w_all.dtype.itemsize
                + 2 * bt * T * H * 4
                + bt * T * 3 * H * 4
                + 3 * bt * T * T * 4)
    vmem_limit = int(min(max(2 * vmem_est, 32 * 1024 * 1024), 96 * 1024 * 1024))

    return pl.pallas_call(
        kernel,
        out_shape=jax.ShapeDtypeStruct((B, T, H), x.dtype),
        grid_spec=pltpu.PrefetchScalarGridSpec(
            num_scalar_prefetch=0,
            grid=(nb,),
            in_specs=[
                pl.BlockSpec((bt, T, C), lambda b: (b, 0, 0)),
                # Constant index_map: the packed weight stays resident in VMEM across
                # batch steps (no re-DMA when the block index is unchanged).
                pl.BlockSpec((C, 3 * H), lambda b: (0, 0)),
            ],
            out_specs=pl.BlockSpec((bt, T, H), lambda b: (b, 0, 0)),
        ),
        compiler_params=pltpu.CompilerParams(
            dimension_semantics=("parallel",),
            vmem_limit_bytes=vmem_limit,
        ),
        cost_estimate=cost,
    )(x, w_all)


def _reference(x, wk, wq, wv):
    # Pure-JAX reference (matches the PyTorch forward in eval mode), highest precision.
    hp = jax.lax.Precision.HIGHEST
    H = wk.shape[1]
    T = x.shape[1]
    k = jnp.einsum("btc,ch->bth", x, wk, precision=hp)
    q = jnp.einsum("btc,ch->bth", x, wq, precision=hp)
    v = jnp.einsum("btc,ch->bth", x, wv, precision=hp)
    scores = jnp.einsum("bqh,bkh->bqk", q, k, precision=hp) * H ** (-0.5)
    mask = jnp.tril(jnp.ones((T, T), dtype=bool))
    scores = jnp.where(mask, scores, -jnp.inf)
    w = jax.nn.softmax(scores, axis=-1)
    return jnp.einsum("bqk,bkh->bqh", w, v, precision=hp)


if __name__ == "__main__":
    # Small shapes consistent with the module: B=2, T=block_size=8, C=input_size=32, H=head_size=16
    B, T, C, H = 2, 8, 32, 16
    key = jax.random.PRNGKey(0)
    kx, kk, kq, kv = jax.random.split(key, 4)

    x = jax.random.normal(kx, (B, T, C), dtype=jnp.float32)
    # Deterministic "Linear(bias=False)" weights, stored as (C, H) == weight.T
    wk = jax.random.normal(kk, (C, H), dtype=jnp.float32) * (C ** -0.5)
    wq = jax.random.normal(kq, (C, H), dtype=jnp.float32) * (C ** -0.5)
    wv = jax.random.normal(kv, (C, H), dtype=jnp.float32) * (C ** -0.5)

    ref = _reference(x, wk, wq, wv)

    # 1) f32 MXU operands + exact reciprocal: tight-tolerance validation of the kernel math.
    w_all_f32 = pack_head_weights(wk, wq, wv, mxu_dtype=jnp.float32)
    out_f32 = jax.block_until_ready(head_forward(x, w_all_f32, H, approx_reciprocal=False))
    assert out_f32.shape == (B, T, H)
    assert jnp.allclose(out_f32, ref, atol=5e-4, rtol=5e-4), "f32 path mismatch vs reference"

    # 2) bf16 MXU operands (f32 accumulation) + approx EUP reciprocal: fast path.
    w_all_bf16 = pack_head_weights(wk, wq, wv, mxu_dtype=jnp.bfloat16)
    out = jax.block_until_ready(head_forward(x, w_all_bf16, H))
    assert out.shape == (B, T, H)
    assert jnp.allclose(out, ref, atol=2e-2, rtol=2e-2), "bf16 path mismatch vs reference"

    print("KERNEL_OK")
</pallas_src>

<mosaic_0001>
module attributes {stable_mosaic.version = 11 : i64} {
  func.func @_head_kernel(%arg0: i32, %arg1: memref<1x8x32xf32, #tpu.memory_space<vmem>>, %arg2: memref<32x48xf32, #tpu.memory_space<vmem>>, %arg3: memref<1x8x16xf32, #tpu.memory_space<vmem>>) attributes {dimension_semantics = [#tpu.dimension_semantics<parallel>], iteration_bounds = array<i64: 2>, scalar_prefetch = 0 : i64, scratch_operands = 0 : i64, tpu.core_type = #tpu.core_type<tc>, window_params = [{transform_indices = @transform_0, window_bounds = array<i64: 1, 8, 32>}, {pipeline_mode = #tpu.pipeline_mode<synchronous>, transform_indices = @transform_1, window_bounds = array<i64: 32, 48>}, {transform_indices = @transform_2, window_bounds = array<i64: 1, 8, 16>}]} {
    %c0 = arith.constant 0 : index
    %c0_0 = arith.constant 0 : index
    %c0_1 = arith.constant 0 : index
    %0 = vector.load %arg1[%c0, %c0_0, %c0_1] : memref<1x8x32xf32, #tpu.memory_space<vmem>>, vector<1x8x32xf32>
    %1 = vector.shape_cast %0 : vector<1x8x32xf32> to vector<8x32xf32>
    %c0_2 = arith.constant 0 : index
    %c0_3 = arith.constant 0 : index
    %2 = vector.load %arg2[%c0_2, %c0_3] : memref<32x48xf32, #tpu.memory_space<vmem>>, vector<32x48xf32>
    %cst = arith.constant dense<0.000000e+00> : vector<8x48xf32>
    %3 = tpu.matmul %1, %2, %cst {dimension_numbers = #tpu.dot_dimension_numbers<[1], [0], [0], [1], [0, 0, 1, 1], [], []>} : vector<8x32xf32>, vector<32x48xf32>, vector<8x48xf32> -> vector<8x48xf32>
    %4 = vector.shape_cast %3 : vector<8x48xf32> to vector<1x8x48xf32>
    %5 = vector.extract_strided_slice %4 {offsets = [0, 0, 0], sizes = [1, 8, 16], strides = [1, 1, 1]} : vector<1x8x48xf32> to vector<1x8x16xf32>
    %6 = vector.extract_strided_slice %4 {offsets = [0, 0, 16], sizes = [1, 8, 16], strides = [1, 1, 1]} : vector<1x8x48xf32> to vector<1x8x16xf32>
    %7 = vector.extract_strided_slice %4 {offsets = [0, 0, 32], sizes = [1, 8, 16], strides = [1, 1, 1]} : vector<1x8x48xf32> to vector<1x8x16xf32>
    %cst_4 = arith.constant 1.600000e+01 : f32
    %cst_5 = arith.constant -5.000000e-01 : f32
    %8 = math.powf %cst_4, %cst_5 : f32
    %9 = vector.broadcast %8 : f32 to vector<1x8x16xf32>
    %10 = arith.mulf %6, %9 : vector<1x8x16xf32>
    %cst_6 = arith.constant dense<0.000000e+00> : vector<1x8x8xf32>
    %11 = tpu.matmul %10, %5, %cst_6 {dimension_numbers = #tpu.dot_dimension_numbers<[2], [2], [1], [1], [0, 0, 0, 1, 1, 1], [0], [0]>} : vector<1x8x16xf32>, vector<1x8x16xf32>, vector<1x8x8xf32> -> vector<1x8x8xf32>
    %12 = tpu.iota {dimensions = array<i32: 0>} : vector<8x8xi32>
    %13 = tpu.iota {dimensions = array<i32: 1>} : vector<8x8xi32>
    %14 = arith.cmpi sge, %12, %13 : vector<8x8xi32>
    %15 = vector.shape_cast %14 : vector<8x8xi1> to vector<1x8x8xi1>
    %cst_7 = arith.constant -2.38197633E+38 : f32
    %16 = vector.broadcast %cst_7 : f32 to vector<1x8x8xf32>
    %17 = arith.select %15, %11, %16 : vector<1x8x8xi1>, vector<1x8x8xf32>
    %cst_8 = arith.constant dense<0xFF800000> : vector<1x8xf32>
    %18 = vector.multi_reduction <maximumf>, %17, %cst_8 [2] : vector<1x8x8xf32> to vector<1x8xf32>
    %19 = vector.shape_cast %18 : vector<1x8xf32> to vector<1x8x1xf32>
    %20 = vector.broadcast %19 : vector<1x8x1xf32> to vector<1x8x8xf32>
    %21 = arith.subf %17, %20 : vector<1x8x8xf32>
    %22 = math.exp %21 : vector<1x8x8xf32>
    %cst_9 = arith.constant dense<0.000000e+00> : vector<1x8xf32>
    %23 = vector.multi_reduction <add>, %22, %cst_9 [2] : vector<1x8x8xf32> to vector<1x8xf32>
    %24 = vector.shape_cast %23 : vector<1x8xf32> to vector<1x8x1xf32>
    %cst_10 = arith.constant dense<0.000000e+00> : vector<1x8x16xf32>
    %25 = tpu.matmul %22, %7, %cst_10 {dimension_numbers = #tpu.dot_dimension_numbers<[2], [1], [1], [2], [0, 0, 0, 1, 1, 2], [0], [0]>} : vector<1x8x8xf32>, vector<1x8x16xf32>, vector<1x8x16xf32> -> vector<1x8x16xf32>
    %26 = tpu.reciprocal %24 : vector<1x8x1xf32> -> vector<1x8x1xf32>
    %27 = vector.broadcast %26 : vector<1x8x1xf32> to vector<1x8x16xf32>
    %28 = arith.mulf %25, %27 : vector<1x8x16xf32>
    %c0_11 = arith.constant 0 : index
    %c0_12 = arith.constant 0 : index
    %c0_13 = arith.constant 0 : index
    %29 = vector.load %arg3[%c0_11, %c0_12, %c0_13] : memref<1x8x16xf32, #tpu.memory_space<vmem>>, vector<1x8x16xf32>
    tpu.vector_store %arg3[%c0_11, %c0_12, %c0_13], %28 {strides = array<i32>} : memref<1x8x16xf32, #tpu.memory_space<vmem>>, vector<1x8x16xf32>,
    return
  }
  func.func @transform_0(%arg0: i32) -> (i32, i32, i32) {
    %c0_i32 = arith.constant 0 : i32
    %c0_i32_0 = arith.constant 0 : i32
    %c0_i32_1 = arith.constant 0 : i32
    return %arg0, %c0_i32, %c0_i32_0 : i32, i32, i32
  }
  func.func @transform_1(%arg0: i32) -> (i32, i32) {
    %c0_i32 = arith.constant 0 : i32
    %c0_i32_0 = arith.constant 0 : i32
    %c0_i32_1 = arith.constant 0 : i32
    return %c0_i32, %c0_i32_0 : i32, i32
  }
  func.func @transform_2(%arg0: i32) -> (i32, i32, i32) {
    %c0_i32 = arith.constant 0 : i32
    %c0_i32_0 = arith.constant 0 : i32
    %c0_i32_1 = arith.constant 0 : i32
    return %arg0, %c0_i32, %c0_i32_0 : i32, i32, i32
  }
}

</mosaic_0001>

<bundles_post_ra>
// kernel: tpu_custom_call.1
= control target key start
LH: loop header
LB: loop body
LE: loop exit
PB: predicated region body
PF: predicated region fallthrough
CT: control target
= control target key end

     0   :  { %7 = vsyncpa [#allocation3], 0  ;;  %s1005_s0 = inlined_call_operand.hbm [shape: f32[2,8,32], index: 0, kind: input, shape index: {}]   ;;  %s1006_s1 = inlined_call_operand.hbm [shape: f32[32,48], index: 1, kind: input, shape index: {}]   ;;  %s1007_s2 = inlined_call_operand.hbm [shape: f32[2,8,16], index: 2, kind: output, shape index: {}]  }
   0x1   :  { %9 = vsyncpa [#allocation3 + $0x1], 0 }
   0x2   :  { %10 = vsyncpa [#allocation6], 0 }
   0x3   :  { %11 = vsyncpa [#allocation4], 0 }
   0x4   :  { %13 = vsyncpa [#allocation4 + $0x1], 0  ;;  %s799_s9 = smov 0   ;;  %s801_s10 = smov 0  }
   0x5   :  { %s803_s11 = smov 0   ;;  %s805_s12 = smov 0  }
   0x6 LB: > { %s820_s13 = sadd.s32 4294967295, %s772_s12   ;;  %s522_s14 = sadd.s32 4294967294, %s772_s12   ;;  %s772_s12 = sphi %s805_s12, %s1027_s12   ;;  %s768_s11 = sphi %s803_s11, %s1026_s11   ;;  %s764_s10 = sphi %s801_s10, %s1025_s10   ;;  %s760_s9 = sphi %s799_s9, %s1024_s9  }
   0x7   : > { %p39_p0 = scmp.ne.s32.totalorder %s764_s10, %s760_s9  ;;  %p1008_p1 = scmp.eq.s32.totalorder %s820_s13, 0 }
   0x8   : > { %p90_p3 = scmp.eq.s32.totalorder %s522_s14, 1  ;;  %p523_p5 = scmp.ge.s32.totalorder %s772_s12, 1 }
   0x9   : > { %p829_p4 = por %p1008_p1, %p39_p0  ;;  %p97_p7 = scmp.lt.s32.totalorder %s772_s12, 3 }
   0xa   : > { %p834_p6 = por %p90_p3, %p39_p0  ;;  %s774_s18 = smov [#allocation5]  }
   0xb   : > { %s1011_s15 = scalar_select %p829_p4, 1, 0 }
   0xc   : > { %s1012_s16 = scalar_select %p834_p6, 1, 0 }
   0xd   : > { %p839_p8 = pnand %p523_p5, %p97_p7  ;;  %s109_s19 = sshll.u32 %s774_s18, 4  ;;  %s843_s19 = int_to_ptr.vmem [resolvable:$true] %s109_s19 }
   0xe   : > { %s855_s21 = sadd.s32 1, %s772_s12   ;;  %s26_s22 = sadd.s32 1, %s768_s11 }
   0xf   : > { %s1013_s17 = scalar_select %p839_p8, 1, 0 }
  0x10   : > { %p584_p9 = pneg %p839_p8  ;;  %s23_s23 = ssub.s32 %s772_s12, %s855_s21 }
  0x11   : > { %s644_s26 = scalar_lea.hbm %s1006_s1, 512 }
  0x12   : > { %p850_p11 = pnand %p584_p9, %p1008_p1  ;;  %p645_p12 = scmp.ne.s32.totalorder %s1006_s1, %s644_s26 }
  0x13   : > { %p651_p5 = scmp.lt.u32.totalorder %s644_s26, %s1006_s1 }
  0x14   : > { %p646_p13 = pneg %p850_p11 }
  0x16   : > { %p647_p0 = pnand %p646_p13, %p645_p12 }
  0x18   : > { %p648_p3 = pneg %p647_p0 }
  0x1a   : > { %p653_p7 = pnand %p651_p5, %p648_p3 }
  0x1c   : > { %656 = shalt.err (!%p653_p7)
}
  0x1d   : > { %s657_s3 = scalar_lea.vmem %s843_s19, 512  ;;  %p665_p2 = scmp.lt.s32.totalorder %s843_s19, %s843_s19 }
  0x1e   : > { %p658_p9 = scmp.ne.s32.totalorder %s843_s19, %s657_s3  ;;  %p666_p6 = scmp.lt.s32.totalorder %s657_s3, %s657_s3 }
  0x20   : > { %p660_p10 = pnand %p658_p9, %p646_p13  ;;  %p667_p4 = por %p666_p6, %p665_p2 }
  0x22   : > { %p661_p1 = pneg %p660_p10 }
  0x24   : > { %p668_p8 = pnand %p667_p4, %p661_p1 }
  0x26   : > { %671 = shalt.err (!%p668_p8)
}
  0x27   : > { %s775_s4 = smov 128   ;;  %s776_s5 = smov 8  }
  0x28   : > { %587 = dma.hbm_to_vmem [thread:$0]  (!%p850_p11), %s1006_s1, 512, %s843_s19, [#allocation6], %s775_s4, %s775_s4, %s776_s5  }
  0x29   : > { %p24_p2 = scmp.eq.s32.totalorder %s23_s23, 0  ;;  %p33_p1 = scmp.ne.s32.totalorder %s768_s11, %s764_s10 }
  0x2a   : > { %p34_p4 = scmp.eq.s32.totalorder %s772_s12, 0  ;;  %p597_p6 = scmp.lt.s32.totalorder %s772_s12, 2 }
  0x2b   : > { %s886_s8 = scalar_select %p24_p2, %s768_s11, %s26_s22  }
  0x2c   : > { %p35_p8 = por %p34_p4, %p33_p1  ;;  %p1015_p10 = scmp.eq.s32.totalorder %s820_s13, 1 }
  0x2d   : > { %s123_s18 = sand.u32 1, %s768_s11   ;;  %s527_s24 = sshll.u32 %s772_s12, 7 }
  0x2e   : > { %p890_p12 = por %p1015_p10, %p33_p1  ;;  %s526_s25 = sshll.u32 %s123_s18, 3 }
  0x2f   : > { %s899_s27 = scalar_lea.hbm %s1005_s0, %s527_s24  ;;  %s127_s19 = scalar_lea.vmem [#allocation2], %s526_s25 }
  0x30   : > { %s134_s22 = sshll.u32 %s127_s19, 4  ;;  %p901_p11 = pnand %p597_p6, %p35_p8  ;;  %s905_s22 = int_to_ptr.vmem [resolvable:$true] %s134_s22 }
  0x31   : > { %s124_s28 = scalar_lea.sflag [#allocation3], %s123_s18  ;;  %s672_s29 = scalar_lea.hbm %s899_s27, 128 }
  0x32   : > { %p673_p13 = scmp.ne.s32.totalorder %s899_s27, %s672_s29  ;;  %p674_p0 = pneg %p901_p11 }
  0x33   : > { %s677_s4 = scalar_lea.hbm %s1005_s0, 256  ;;  %p678_p7 = scmp.lt.u32.totalorder %s899_s27, %s1005_s0 }
  0x34   : > { %p675_p3 = pnand %p674_p0, %p673_p13  ;;  %p679_p9 = scmp.lt.u32.totalorder %s677_s4, %s672_s29 }
  0x35   : > { %p681_p1 = scmp.lt.u32.totalorder %s672_s29, %s899_s27 }
  0x36   : > { %p676_p5 = pneg %p675_p3  ;;  %p680_p2 = por %p679_p9, %p678_p7 }
  0x38   : > { %p682_p4 = por %p681_p1, %p680_p2 }
  0x3a   : > { %p683_p6 = pnand %p682_p4, %p676_p5 }
  0x3c   : > { %686 = shalt.err (!%p683_p6)
}
  0x3d   : > { %s687_s7 = scalar_lea.vmem %s905_s22, 128  ;;  %s777_s18 = smov [#allocation2]  }
  0x3e   : > { %p688_p8 = scmp.ne.s32.totalorder %s905_s22, %s687_s7  ;;  %s692_s24 = sshll.u32 %s777_s18, 4  ;;  %s693_s24 = int_to_ptr.vmem [resolvable:$false] %s692_s24 }
  0x3f   : > { %s694_s25 = scalar_lea.vmem %s693_s24, 256  ;;  %p695_p3 = scmp.lt.s32.totalorder %s905_s22, %s693_s24 }
  0x40   : > { %p690_p10 = pnand %p688_p8, %p674_p0  ;;  %p696_p7 = scmp.lt.s32.totalorder %s694_s25, %s687_s7 }
  0x42   : > { %p691_p13 = pneg %p690_p10  ;;  %p697_p9 = por %p696_p7, %p695_p3 }
  0x44   : > { %p698_p2 = pnand %p697_p9, %p691_p13 }
  0x46   : > { %701 = shalt.err (!%p698_p2)
}
  0x47   : > { %591 = dma.hbm_to_vmem [thread:$0]  (!%p901_p11), %s899_s27, 128, %s905_s22, %s124_s28  }
  0x48   : > { %p1018_p5 = scmp.ne.s32.totalorder %s1013_s17, 0 }
  0x49   : > { %s935_s20 = sand.u32 (!%p1018_p5), 1, %s764_s10   ;;  %p1019_p0 = scmp.ne.s32.totalorder (!%p1018_p5), %s1011_s15, 0 }
  0x4a   : > { %143 = sbr.rel (%p1018_p5) target bundleno = 1023 (0x3ff), region = 28  ;;  %s529_s26 = sshll.u32 (!%p1018_p5), %s935_s20, 3 }
  0x4b   : > { %s146_s19 = scalar_lea.sflag (!%p1018_p5), [#allocation3], %s935_s20  ;;  %s149_s29 = scalar_lea.vmem (!%p1018_p5), [#allocation2], %s529_s26 }
  0x51   : > { %747 = dma.done.wait (%p1019_p0), %s146_s19, 128  }
  0x52   : > { %749 = vsyncadd (%p1019_p0), %s146_s19, 4294967168  ;;  %p1020_p11 = scmp.eq.s32.totalorder %s820_s13, 0 }
  0x54   : > { %751 = dma.done.wait (%p1020_p11), [#allocation6], 512   ;;  %p1021_p1 = pmov %p1020_p11 }
  0x55   : > { %v778_v0 = vmov 0.0|0.0   ;;  %vm779_vm0 = vmmov 0   ;;  %v780_v1 = vmov 0.0   ;;  %v175_v2 = vld [vmem:[#allocation5] sm:$0xff]  ;;  %v176_v3 = vld [vmem:[#allocation5 + $0x8] sm:$0xff]  ;;  %v177_v4 = vld [vmem:[#allocation5 + $0x10] sm:$0xff]  ;;  %v333_v14 = vlaneseq }
  0x56   : > { %753 = vsyncadd (%p1021_p1), [#allocation6], 4294966784  ;;  %570 = vmatprep.subr.bf16.mxu0 %v778_v0  ;;  %557 = vmatprep.mubr.msk.f32.mxu0 %vm779_vm0, %v780_v1  ;;  %v571_v5 = vpack.c.bf16 %v176_v3, %v175_v2  ;;  %v178_v6 = vld [vmem:[#allocation5 + $0x18] sm:$0xff]  ;;  %vm179_vm1 = vcmask 261120   ;;  %vm257_vm2 = vcmask 130048   ;;  %s781_s15 = smov 96  }
  0x57   : > { %560 = vmatprep.subr.mxu1 %v780_v1  ;;  %562 = vmatprep.mubr.msk.f32.mxu1 %vm779_vm0, %v780_v1  ;;  %v574_v7 = vpack.c.bf16 %v178_v6, %v177_v4  ;;  %v174_v8 = vld [vmem:[%s149_s29] sm:$0xff]  ;;  %s782_s17 = smov 112   ;;  %v334_v15 = vshrl.u32 %v333_v14, 7  ;;  %v336_v16 = vand.u32 127, %v333_v14  ;;  %vm339_vm4 = vcmask 64512   ;;  %s537_s27 = sshll.u32 %s820_s13, 7 }
  0x58   : > { %572 = vmatpush3.bf16.msra.mxu0 %v571_v5  ;;  %s173_s22 = scalar_lea.vmem [#allocation7], %s529_s26  ;;  %s960_s3 = scalar_lea.hbm %s1007_s2, %s537_s27 }
  0x59   : > { %573 = vmatprep.subr.bf16.mxu0 %v778_v0  ;;  %vm337_vm3 = vcmp.ge.s32.totalorder %v334_v15, %v336_v16  ;;  %s442_s23 = sshll.u32 %s173_s22, 4  ;;  %s429_s13 = scalar_lea.sflag [#allocation4], %s935_s20  ;;  %s962_s23 = int_to_ptr.vmem [resolvable:$true] %s442_s23 }
  0x5a   : > { %s702_s4 = scalar_lea.vmem %s962_s23, 128  ;;  %s783_s5 = smov [#allocation7]  }
  0x5b   : > { %p703_p4 = scmp.ne.s32.totalorder %s962_s23, %s702_s4  ;;  %s706_s6 = sshll.u32 %s783_s5, 4  ;;  %s707_s6 = int_to_ptr.vmem [resolvable:$false] %s706_s6 }
  0x5c   : > { %575 = vmatpush3.bf16.msra.mxu0 %v574_v7  ;;  %s708_s7 = scalar_lea.vmem %s707_s6, 256  ;;  %p709_p10 = scmp.lt.s32.totalorder %s962_s23, %s707_s6 }
  0x5d   : > { %p704_p6 = pnand %p703_p4, %p890_p12  ;;  %p710_p13 = scmp.lt.s32.totalorder %s708_s7, %s702_s4 }
  0x5f   : > { %558 = vmatmul.mubr.msk.f32.vlgmr.msra.gmra.mrb[0].mxu0 %vm179_vm1, %v174_v8  ;;  %p705_p8 = pneg %p704_p6  ;;  %p711_p3 = por %p710_p13, %p709_p10 }
  0x61   : > { %p712_p7 = pnand %p711_p3, %p705_p8 }
 0x132   : > { %v249_v9 = vpop.f32.mrb[0].mxu0 }
 0x133   : > { %349 = vrot.lane.b32.xlu1 %v249_v9, %s781_s15  ;;  %v559_v10 = vpop.f32.mrb[1].mxu0  ;;  %561 = vmatpush3.xpose.msk.msra.mxu1 %vm257_vm2, %v249_v9  ;;  %v253_v11 = vmul.f32 0.25, %v249_v9 }
 0x134   : > { %565 = vmatprep.subr.mxu1 %v780_v1 }
 0x135   : > { %255 = vrot.lane.b32.xlu0 %v253_v11, %s782_s17 }
 0x1a5   : > { %v350_v13 = vpop.permute.xlu1 %349 }
 0x1a7   : > { %v256_v12 = vpop.permute.xlu0 %255 }
 0x1a8   : > { %563 = vmatmul.mubr.msk.f32.vlgmr.msra.gmra.mrb[0].mxu1 %vm257_vm2, %v256_v12 }
 0x1a9   : > { %566 = vmatpush3.msra.mxu1 %v350_v13  ;;  %567 = vmatprep.mubr.msk.f32.mxu1 %vm779_vm0, %v780_v1 }
 0x27b   : > { %v329_v17 = vpop.f32.mrb[0].mxu1 }
 0x27c   : > { %v338_v18 = vsel %vm337_vm3, %v329_v17, -2.3819763e+38  ;;  %v564_v19 = vpop.f32.mrb[1].mxu1 }
 0x27d   : > { %v340_v20 = vsel %vm339_vm4, %v338_v18, -inf }
 0x27e   : > { %341 = vmax.xlane.f32.xlu0 %v340_v20 }
 0x30b   : > { %v342_v21 = vpop.xlane.xlu0 %341 }
 0x30c   : > { %v343_v22 = vsub.f32 %v338_v18, %v342_v21 }
 0x30e   : > { %v344_v23 = vmul.f32 1.442695, %v343_v22 }
 0x310   : > { %640 = vpow2.f32 %v344_v23 }
 0x31a   : > { %v641_v24 = vpop.eup %640 }
 0x31b   : > { %568 = vmatmul.mubr.msk.f32.vlgmr.msra.gmra.mrb[2].mxu1 %vm339_vm4, %v641_v24  ;;  %v346_v25 = vsel %vm339_vm4, %v641_v24, 0.0 }
 0x31c   : > { %347 = vadd.xlane.f32.xlu1 %v346_v25 }
 0x3a9   : > { %v348_v26 = vpop.xlane.xlu1 %347 }
 0x3aa   : > { %642 = vrcp.f32 %v348_v26 }
 0x3b4   : > { %v643_v27 = vpop.eup %642 }
 0x3ee   : > { %v421_v28 = vpop.f32.mrb[2].mxu1 }
 0x3ef   : > { %v426_v29 = vmul.f32 %v643_v27, %v421_v28  ;;  %v569_v30 = vpop.f32.mrb[3].mxu1 }
 0x3f1   : > { %427 = vst.msk [vmem:[%s173_s22] sm:$0xff] %vm257_vm2, %v426_v29 }
 0x3f2   : > { %715 = shalt.err (!%p712_p7)
}
 0x3f3   : > { %s716_s18 = scalar_lea.hbm %s960_s3, 128  ;;  %s720_s20 = scalar_lea.hbm %s1007_s2, 256 }
 0x3f4   : > { %p717_p9 = scmp.ne.s32.totalorder %s960_s3, %s716_s18  ;;  %p721_p0 = scmp.lt.u32.totalorder %s960_s3, %s1007_s2 }
 0x3f5   : > { %p722_p11 = scmp.lt.u32.totalorder %s720_s20, %s716_s18  ;;  %p724_p4 = scmp.lt.u32.totalorder %s716_s18, %s960_s3 }
 0x3f6   : > { %p718_p2 = pnand %p717_p9, %p890_p12 }
 0x3f7   : > { %p723_p1 = por %p722_p11, %p721_p0 }
 0x3f8   : > { %p719_p5 = pneg %p718_p2 }
 0x3f9   : > { %p725_p6 = por %p724_p4, %p723_p1 }
 0x3fb   : > { %p726_p8 = pnand %p725_p6, %p719_p5 }
 0x3fd   : > { %729 = shalt.err (!%p726_p8)
}
 0x3fe   : > { %582 = dma.vmem_to_hbm [thread:$0]  (%p890_p12), %s962_s23, 128, %s960_s3, %s429_s13  }
 0x3ff PF: > { %s454_s29 = sand.u32 1, %s760_s9   ;;  %p1022_p10 = scmp.ne.s32.totalorder %s1012_s16, 0 }
 0x400   : > { %p1023_p13 = scmp.ge.s32.totalorder %s772_s12, 2  ;;  %s455_s15 = scalar_lea.sflag [#allocation4], %s454_s29 }
 0x402   : > { %p593_p3 = pnand %p1023_p13, %p1022_p10 }
 0x404   : > { %755 = dma.done.wait (!%p593_p3), %s455_s15, 128  }
 0x405   : > { %757 = vsyncadd (!%p593_p3), %s455_s15, 4294967168  ;;  %p16_p7 = scmp.ge.s32.totalorder %s855_s21, 4   ;;  %s1024_s9 = smov %s764_s10 }
 0x406   : > { %s1025_s10 = smov %s768_s11  ;;  %s1026_s11 = smov %s886_s8 }
 0x407   : > { %s1027_s12 = smov %s855_s21  ;;  %18 = sbr.rel (!%p16_p7) target bundleno = 6 (0x6), region = 77 }
 0x40e   :  { %460 = vsyncpa [#allocation3], 1 }
 0x40f   :  { %462 = vsyncpa [#allocation3 + $0x1], 1 }
 0x410   :  { %463 = vsyncpa [#allocation6], 1 }
 0x411   :  { %464 = vsyncpa [#allocation4], 1 }
 0x412   :  { %466 = vsyncpa [#allocation4 + $0x1], 1 }

</bundles_post_ra>
